<compile_context>
chip_gen: v6e
topology: v6e:2x2x1
jax: 0.10.0
libtpu: 0.0.40
codegen_flags: <defaults>
</compile_context>

<pallas_src>
import math

import jax
import jax.numpy as jnp
from jax.experimental import pallas as pl
from jax.experimental.pallas import tpu as pltpu

_SUBLANE = 8  # f32 sublane granularity (min batch-tile quantum)


def fcdp_kernel(x_ref, w1_ref, b1_ref, w2_ref, b2_ref, w3_ref, b3_ref,
                scale_ref, shift_ref, out_ref):
    # Cast (if any) happens in-kernel so no extra HBM copy of x is made.
    x = x_ref[...].astype(w1_ref.dtype)

    # Hidden layer 1: Linear + ReLU (MXU matmul, f32 accumulation).
    h1 = jnp.dot(x, w1_ref[...], preferred_element_type=jnp.float32) + b1_ref[...]
    h1 = jnp.maximum(h1, 0.0)

    # Hidden layer 2: Linear + ReLU.
    h2 = jnp.dot(h1.astype(w2_ref.dtype), w2_ref[...],
                 preferred_element_type=jnp.float32) + b2_ref[...]
    h2 = jnp.maximum(h2, 0.0)

    # Output layer: Linear + Tanh (EUP), then fused affine rescale (VPU FMA).
    y = jnp.dot(h2.astype(w3_ref.dtype), w3_ref[...],
                preferred_element_type=jnp.float32) + b3_ref[...]
    y = jnp.tanh(y)

    # Compact (TB, A) store. A < 128 -> masked vst, but VPU/VMEM have huge
    # slack here; HBM write traffic is what matters and it's now minimal.
    out_ref[...] = y * scale_ref[...] + shift_ref[...]


def prepare_fcdp_params(params, action_min, action_max, *,
                        compute_dtype=jnp.float32):
    """One-time parameter prep (hoisted out of the per-call path).

    Normalizes biases to (1, H) rows, folds the tanh-range rescale into
    (scale, shift), and optionally casts weights to `compute_dtype`
    (e.g. bf16 on all gens / fp8 on v7x; int8 only on v5e/v6e).
    """
    w1, b1, w2, b2, w3, b3 = params
    A = w3.shape[1]

    b1 = jnp.asarray(b1, jnp.float32).reshape(1, -1)
    b2 = jnp.asarray(b2, jnp.float32).reshape(1, -1)
    b3 = jnp.asarray(b3, jnp.float32).reshape(1, A)

    amin = jnp.asarray(action_min, jnp.float32).reshape(1, A)
    amax = jnp.asarray(action_max, jnp.float32).reshape(1, A)
    scale = (amax - amin) * 0.5          # (nn range is [-1, 1])
    shift = scale + amin                 # out = y*scale + shift == rescale_fn(tanh)

    return (jnp.asarray(w1, compute_dtype), b1,
            jnp.asarray(w2, compute_dtype), b2,
            jnp.asarray(w3, compute_dtype), b3,
            scale, shift)


def fcdp_forward(x, prepared_params, *, block_b=4096):
    """x: [B, input_dim] float32 -> [B, action_dim] float32."""
    w1, b1, w2, b2, w3, b3, scale, shift = prepared_params
    B, D = x.shape
    H1 = w1.shape[1]
    H2 = w2.shape[1]
    A = w3.shape[1]

    # Batch tile: multiple of the f32 sublane (8), capped at block_b, and also
    # capped at ~ceil(B/2) so the grid has >= 2 steps when the batch allows
    # (lets dimension_semantics=("parallel",) shard across both TCs on v7x).
    tb_cap = max(_SUBLANE, (block_b // _SUBLANE) * _SUBLANE)
    half_b = pl.cdiv(pl.cdiv(B, 2), _SUBLANE) * _SUBLANE
    TB = min(tb_cap, max(_SUBLANE, half_b))

    # No host-side pad: ragged last block handled by Pallas (boundary reads
    # padded, boundary writes masked); pad rows never contaminate real rows.
    grid = (pl.cdiv(B, TB),)

    const2d = lambda i: (0, 0)
    in_specs = [
        # x streamed per batch tile. If profiling shows exposed DMA at step
        # boundaries, add pipeline_mode=pl.Buffered(3) here.
        pl.BlockSpec((TB, D), lambda i: (i, 0)),
        pl.BlockSpec((D, H1), const2d),    # W1 (VMEM-resident)
        pl.BlockSpec((1, H1), const2d),    # b1
        pl.BlockSpec((H1, H2), const2d),   # W2
        pl.BlockSpec((1, H2), const2d),    # b2
        pl.BlockSpec((H2, A), const2d),    # W3 (compact)
        pl.BlockSpec((1, A), const2d),     # b3
        pl.BlockSpec((1, A), const2d),     # scale
        pl.BlockSpec((1, A), const2d),     # shift
    ]
    out_spec = pl.BlockSpec((TB, A), lambda i: (i, 0))   # compact output

    return pl.pallas_call(
        fcdp_kernel,
        out_shape=jax.ShapeDtypeStruct((B, A), jnp.float32),
        grid=grid,
        in_specs=in_specs,
        out_specs=out_spec,
        compiler_params=pltpu.CompilerParams(
            dimension_semantics=("parallel",),   # megacore-shard batch on v7x
        ),
    )(x, w1, b1, w2, b2, w3, b3, scale, shift)


def init_linear(key, fan_in, fan_out):
    """PyTorch nn.Linear default init: U(-1/sqrt(fan_in), 1/sqrt(fan_in))."""
    kw, kb = jax.random.split(key)
    bound = 1.0 / math.sqrt(fan_in)
    # stored as [in, out] (transposed vs torch's [out, in]) so kernel does x @ W
    w = jax.random.uniform(kw, (fan_in, fan_out), jnp.float32, -bound, bound)
    b = jax.random.uniform(kb, (fan_out,), jnp.float32, -bound, bound)
    return w, b


if __name__ == "__main__":
    key = jax.random.PRNGKey(0)

    # Small shapes consistent with the module
    batch = 2
    input_dim = 16
    hidden_dims = (32, 32)
    action_dim = 4

    # Deterministic action bounds
    action_min = jnp.array([-2.0, -1.0, -0.5, -3.0], dtype=jnp.float32)
    action_max = jnp.array([2.0, 1.0, 0.5, 3.0], dtype=jnp.float32)

    k_x, k1, k2, k3 = jax.random.split(key, 4)
    w1, b1 = init_linear(k1, input_dim, hidden_dims[0])
    w2, b2 = init_linear(k2, hidden_dims[0], hidden_dims[1])
    w3, b3 = init_linear(k3, hidden_dims[1], action_dim)

    prepared = prepare_fcdp_params((w1, b1, w2, b2, w3, b3),
                                   action_min, action_max)

    x = jax.random.normal(k_x, (batch, input_dim), dtype=jnp.float32)

    out = fcdp_forward(x, prepared)
    out = jax.block_until_ready(out)

    # Reference check in plain JAX (same math as the PyTorch forward)
    h1 = jnp.maximum(x @ w1 + b1, 0.0)
    h2 = jnp.maximum(h1 @ w2 + b2, 0.0)
    y = jnp.tanh(h2 @ w3 + b3)
    ref = (y - (-1.0)) * (action_max - action_min) / (1.0 - (-1.0)) + action_min

    assert out.shape == (batch, action_dim)
    assert jnp.allclose(out, ref, atol=1e-5, rtol=1e-5)

    print("KERNEL_OK")
</pallas_src>

<mosaic_0001>
module attributes {stable_mosaic.version = 11 : i64} {
  func.func @fcdp_kernel(%arg0: i32, %arg1: memref<8x16xf32, #tpu.memory_space<vmem>>, %arg2: memref<16x32xf32, #tpu.memory_space<vmem>>, %arg3: memref<1x32xf32, #tpu.memory_space<vmem>>, %arg4: memref<32x32xf32, #tpu.memory_space<vmem>>, %arg5: memref<1x32xf32, #tpu.memory_space<vmem>>, %arg6: memref<32x4xf32, #tpu.memory_space<vmem>>, %arg7: memref<1x4xf32, #tpu.memory_space<vmem>>, %arg8: memref<1x4xf32, #tpu.memory_space<vmem>>, %arg9: memref<1x4xf32, #tpu.memory_space<vmem>>, %arg10: memref<8x4xf32, #tpu.memory_space<vmem>>) attributes {dimension_semantics = [#tpu.dimension_semantics<parallel>], iteration_bounds = array<i64: 1>, scalar_prefetch = 0 : i64, scratch_operands = 0 : i64, tpu.core_type = #tpu.core_type<tc>, window_params = [{transform_indices = @transform_0, window_bounds = array<i64: 8, 16>}, {pipeline_mode = #tpu.pipeline_mode<synchronous>, transform_indices = @transform_1, window_bounds = array<i64: 16, 32>}, {pipeline_mode = #tpu.pipeline_mode<synchronous>, transform_indices = @transform_2, window_bounds = array<i64: 1, 32>}, {pipeline_mode = #tpu.pipeline_mode<synchronous>, transform_indices = @transform_3, window_bounds = array<i64: 32, 32>}, {pipeline_mode = #tpu.pipeline_mode<synchronous>, transform_indices = @transform_4, window_bounds = array<i64: 1, 32>}, {pipeline_mode = #tpu.pipeline_mode<synchronous>, transform_indices = @transform_5, window_bounds = array<i64: 32, 4>}, {pipeline_mode = #tpu.pipeline_mode<synchronous>, transform_indices = @transform_6, window_bounds = array<i64: 1, 4>}, {pipeline_mode = #tpu.pipeline_mode<synchronous>, transform_indices = @transform_7, window_bounds = array<i64: 1, 4>}, {pipeline_mode = #tpu.pipeline_mode<synchronous>, transform_indices = @transform_8, window_bounds = array<i64: 1, 4>}, {transform_indices = @transform_9, window_bounds = array<i64: 8, 4>}]} {
    %c0 = arith.constant 0 : index
    %c0_0 = arith.constant 0 : index
    %0 = vector.load %arg1[%c0, %c0_0] : memref<8x16xf32, #tpu.memory_space<vmem>>, vector<8x16xf32>
    %c0_1 = arith.constant 0 : index
    %c0_2 = arith.constant 0 : index
    %1 = vector.load %arg2[%c0_1, %c0_2] : memref<16x32xf32, #tpu.memory_space<vmem>>, vector<16x32xf32>
    %cst = arith.constant dense<0.000000e+00> : vector<8x32xf32>
    %2 = tpu.matmul %0, %1, %cst {dimension_numbers = #tpu.dot_dimension_numbers<[1], [0], [0], [1], [0, 0, 1, 1], [], []>} : vector<8x16xf32>, vector<16x32xf32>, vector<8x32xf32> -> vector<8x32xf32>
    %c0_3 = arith.constant 0 : index
    %c0_4 = arith.constant 0 : index
    %3 = vector.load %arg3[%c0_3, %c0_4] : memref<1x32xf32, #tpu.memory_space<vmem>>, vector<1x32xf32>
    %4 = vector.broadcast %3 : vector<1x32xf32> to vector<8x32xf32>
    %5 = arith.addf %2, %4 : vector<8x32xf32>
    %cst_5 = arith.constant 0.000000e+00 : f32
    %6 = vector.broadcast %cst_5 : f32 to vector<8x32xf32>
    %7 = arith.maximumf %5, %6 : vector<8x32xf32>
    %c0_6 = arith.constant 0 : index
    %c0_7 = arith.constant 0 : index
    %8 = vector.load %arg4[%c0_6, %c0_7] : memref<32x32xf32, #tpu.memory_space<vmem>>, vector<32x32xf32>
    %cst_8 = arith.constant dense<0.000000e+00> : vector<8x32xf32>
    %9 = tpu.matmul %7, %8, %cst_8 {dimension_numbers = #tpu.dot_dimension_numbers<[1], [0], [0], [1], [0, 0, 1, 1], [], []>} : vector<8x32xf32>, vector<32x32xf32>, vector<8x32xf32> -> vector<8x32xf32>
    %c0_9 = arith.constant 0 : index
    %c0_10 = arith.constant 0 : index
    %10 = vector.load %arg5[%c0_9, %c0_10] : memref<1x32xf32, #tpu.memory_space<vmem>>, vector<1x32xf32>
    %11 = vector.broadcast %10 : vector<1x32xf32> to vector<8x32xf32>
    %12 = arith.addf %9, %11 : vector<8x32xf32>
    %cst_11 = arith.constant 0.000000e+00 : f32
    %13 = vector.broadcast %cst_11 : f32 to vector<8x32xf32>
    %14 = arith.maximumf %12, %13 : vector<8x32xf32>
    %c0_12 = arith.constant 0 : index
    %c0_13 = arith.constant 0 : index
    %15 = vector.load %arg6[%c0_12, %c0_13] : memref<32x4xf32, #tpu.memory_space<vmem>>, vector<32x4xf32>
    %cst_14 = arith.constant dense<0.000000e+00> : vector<8x4xf32>
    %16 = tpu.matmul %14, %15, %cst_14 {dimension_numbers = #tpu.dot_dimension_numbers<[1], [0], [0], [1], [0, 0, 1, 1], [], []>} : vector<8x32xf32>, vector<32x4xf32>, vector<8x4xf32> -> vector<8x4xf32>
    %c0_15 = arith.constant 0 : index
    %c0_16 = arith.constant 0 : index
    %17 = vector.load %arg7[%c0_15, %c0_16] : memref<1x4xf32, #tpu.memory_space<vmem>>, vector<1x4xf32>
    %18 = vector.broadcast %17 : vector<1x4xf32> to vector<8x4xf32>
    %19 = arith.addf %16, %18 : vector<8x4xf32>
    %20 = math.tanh %19 : vector<8x4xf32>
    %c0_17 = arith.constant 0 : index
    %c0_18 = arith.constant 0 : index
    %21 = vector.load %arg8[%c0_17, %c0_18] : memref<1x4xf32, #tpu.memory_space<vmem>>, vector<1x4xf32>
    %22 = vector.broadcast %21 : vector<1x4xf32> to vector<8x4xf32>
    %23 = arith.mulf %20, %22 : vector<8x4xf32>
    %c0_19 = arith.constant 0 : index
    %c0_20 = arith.constant 0 : index
    %24 = vector.load %arg9[%c0_19, %c0_20] : memref<1x4xf32, #tpu.memory_space<vmem>>, vector<1x4xf32>
    %25 = vector.broadcast %24 : vector<1x4xf32> to vector<8x4xf32>
    %26 = arith.addf %23, %25 : vector<8x4xf32>
    %c0_21 = arith.constant 0 : index
    %c0_22 = arith.constant 0 : index
    %27 = vector.load %arg10[%c0_21, %c0_22] : memref<8x4xf32, #tpu.memory_space<vmem>>, vector<8x4xf32>
    tpu.vector_store %arg10[%c0_21, %c0_22], %26 {strides = array<i32>} : memref<8x4xf32, #tpu.memory_space<vmem>>, vector<8x4xf32>,
    return
  }
  func.func @transform_0(%arg0: i32) -> (i32, i32) {
    %c0_i32 = arith.constant 0 : i32
    %c0_i32_0 = arith.constant 0 : i32
    return %arg0, %c0_i32 : i32, i32
  }
  func.func @transform_1(%arg0: i32) -> (i32, i32) {
    %c0_i32 = arith.constant 0 : i32
    %c0_i32_0 = arith.constant 0 : i32
    %c0_i32_1 = arith.constant 0 : i32
    return %c0_i32, %c0_i32_0 : i32, i32
  }
  func.func @transform_2(%arg0: i32) -> (i32, i32) {
    %c0_i32 = arith.constant 0 : i32
    %c0_i32_0 = arith.constant 0 : i32
    %c0_i32_1 = arith.constant 0 : i32
    return %c0_i32, %c0_i32_0 : i32, i32
  }
  func.func @transform_3(%arg0: i32) -> (i32, i32) {
    %c0_i32 = arith.constant 0 : i32
    %c0_i32_0 = arith.constant 0 : i32
    %c0_i32_1 = arith.constant 0 : i32
    return %c0_i32, %c0_i32_0 : i32, i32
  }
  func.func @transform_4(%arg0: i32) -> (i32, i32) {
    %c0_i32 = arith.constant 0 : i32
    %c0_i32_0 = arith.constant 0 : i32
    %c0_i32_1 = arith.constant 0 : i32
    return %c0_i32, %c0_i32_0 : i32, i32
  }
  func.func @transform_5(%arg0: i32) -> (i32, i32) {
    %c0_i32 = arith.constant 0 : i32
    %c0_i32_0 = arith.constant 0 : i32
    %c0_i32_1 = arith.constant 0 : i32
    return %c0_i32, %c0_i32_0 : i32, i32
  }
  func.func @transform_6(%arg0: i32) -> (i32, i32) {
    %c0_i32 = arith.constant 0 : i32
    %c0_i32_0 = arith.constant 0 : i32
    %c0_i32_1 = arith.constant 0 : i32
    return %c0_i32, %c0_i32_0 : i32, i32
  }
  func.func @transform_7(%arg0: i32) -> (i32, i32) {
    %c0_i32 = arith.constant 0 : i32
    %c0_i32_0 = arith.constant 0 : i32
    %c0_i32_1 = arith.constant 0 : i32
    return %c0_i32, %c0_i32_0 : i32, i32
  }
  func.func @transform_8(%arg0: i32) -> (i32, i32) {
    %c0_i32 = arith.constant 0 : i32
    %c0_i32_0 = arith.constant 0 : i32
    %c0_i32_1 = arith.constant 0 : i32
    return %c0_i32, %c0_i32_0 : i32, i32
  }
  func.func @transform_9(%arg0: i32) -> (i32, i32) {
    %c0_i32 = arith.constant 0 : i32
    %c0_i32_0 = arith.constant 0 : i32
    return %arg0, %c0_i32 : i32, i32
  }
}

</mosaic_0001>

<bundles_post_ra>
// kernel: tpu_custom_call.1
= control target key start
LH: loop header
LB: loop body
LE: loop exit
PB: predicated region body
PF: predicated region fallthrough
CT: control target
= control target key end

     0   :  { %14 = vsyncpa [#allocation3], 0  ;;  %s553_s0 = inlined_call_operand.vmem [shape: f32[2,16], index: 0, kind: input, shape index: {}]   ;;  %s554_s1 = inlined_call_operand.hbm [shape: f32[16,32], index: 1, kind: input, shape index: {}]   ;;  %s555_s2 = inlined_call_operand.vmem [shape: f32[1,32], index: 2, kind: input, shape index: {}]   ;;  %s556_s3 = inlined_call_operand.vmem [shape: f32[32,32], index: 3, kind: input, shape index: {}]   ;;  %s557_s4 = inlined_call_operand.vmem [shape: f32[1,32], index: 4, kind: input, shape index: {}]   ;;  %s558_s5 = inlined_call_operand.vmem [shape: f32[32,4], index: 5, kind: input, shape index: {}]   ;;  %s559_s6 = inlined_call_operand.vmem [shape: f32[1,4], index: 6, kind: input, shape index: {}]   ;;  %s560_s7 = inlined_call_operand.vmem [shape: f32[1,4], index: 7, kind: input, shape index: {}]   ;;  %s561_s8 = inlined_call_operand.vmem [shape: f32[1,4], index: 8, kind: input, shape index: {}]   ;;  %s562_s9 = inlined_call_operand.hbm [shape: f32[2,4], index: 9, kind: output, shape index: {}]  }
   0x1   :  { %15 = vsyncpa [#allocation4], 0  ;;  %s442_s30 = smov [#allocation2]  }
   0x2   :  { %s23_s10 = sshll.u32 %s442_s30, 4  ;;  %s24_s10 = int_to_ptr.vmem [resolvable:$true] %s23_s10 }
   0x3   :  { %s406_s11 = scalar_lea.vmem %s24_s10, 256  ;;  %p411_p1 = scmp.lt.s32.totalorder %s24_s10, %s24_s10 }
   0x4   :  { %p407_p0 = scmp.ne.s32.totalorder %s24_s10, %s406_s11  ;;  %p412_p2 = scmp.lt.s32.totalorder %s406_s11, %s406_s11 }
   0x6   :  { %p413_p3 = por %p412_p2, %p411_p1 }
   0x8   :  { %p414_p4 = pnand %p413_p3, %p407_p0 }
   0xa   :  { %417 = shalt.err (!%p414_p4)
}
   0xb   :  { %s443_s12 = smov 128   ;;  %s444_s13 = smov 8  }
   0xc   :  { %29 = dma.hbm_to_vmem [thread:$0]  %s554_s1, 256, %s24_s10, [#allocation3], %s443_s12, %s443_s12, %s444_s13  }
   0xd   :  { %438 = dma.done.wait [#allocation3], 256  }
   0xe   :  { %439 = vsyncadd [#allocation3], 4294967040  ;;  %v445_v0 = vmov 0.0   ;;  %vm446_vm0 = vmmov 0   ;;  %v49_v1 = vld [vmem:[#allocation2 + $0x8] sm:$0xff]  ;;  %v48_v2 = vld [vmem:[#allocation2] sm:$0xff] }
   0xf   :  { %359 = vmatprep.subr.mxu0 %v445_v0  ;;  %363 = vmatprep.mubr.msk.f32.mxu0 %vm446_vm0, %v445_v0  ;;  %v47_v3 = vld [vmem:[%s553_s0] sm:$0xff]  ;;  %vm57_vm1 = vcmask 130048   ;;  %v135_v4 = vld [vmem:[%s556_s3 + $0x18] sm:$0xff]  ;;  %v134_v5 = vld [vmem:[%s556_s3 + $0x10] sm:$0xff]  ;;  %vm143_vm2 = vcmask 261120   ;;  %vm319_vm3 = vcmask 31744  }
  0x10   :  { %366 = vmatprep.subr.mxu1 %v445_v0  ;;  %374 = vmatprep.mubr.msk.f32.mxu1 %vm446_vm0, %v445_v0  ;;  %v133_v6 = vld [vmem:[%s556_s3 + $0x8] sm:$0xff]  ;;  %v132_v7 = vld [vmem:[%s556_s3] sm:$0xff]  ;;  %v221_v8 = vld [vmem:[%s558_s5 + $0x18] sm:$0xff] }
  0x11   :  { %360 = vmatpush3.msra.mxu0 %v49_v1  ;;  %367 = vmatpush3.msra.mxu1 %v135_v4  ;;  %v338_v9 = vld [vmem:[%s555_s2] ss:$0 sm:$0xff]  ;;  %v220_v14 = vld [vmem:[%s558_s5 + $0x10] sm:$0xff]  ;;  %v219_v15 = vld [vmem:[%s558_s5 + $0x8] sm:$0xff] }
  0x12   :  { %361 = vmatprep.subr.mxu0 %v445_v0  ;;  %368 = vmatprep.subr.mxu1 %v445_v0  ;;  %v218_v16 = vld [vmem:[%s558_s5] sm:$0xff] }
  0x13   :  { %362 = vmatpush3.msra.mxu0 %v48_v2  ;;  %369 = vmatpush3.msra.mxu1 %v134_v5  ;;  %v340_v17 = vld [vmem:[%s557_s4] ss:$0 sm:$0xff] }
  0x14   :  { %364 = vmatmul.mubr.msk.f32.vlgmr.msra.gmra.mxu0 %vm57_vm1, %v47_v3  ;;  %377 = vmatprep.subr.mxu0 %v445_v0  ;;  %v342_v22 = vld [vmem:[%s559_s6] ss:$0 sm:$0xff] }
  0x15   :  { %385 = vmatprep.mubr.msk.f32.mxu0 %vm446_vm0, %v445_v0  ;;  %370 = vmatprep.subr.mxu1 %v445_v0  ;;  %v344_v26 = vld [vmem:[%s560_s7] ss:$0 sm:$0xff] }
  0x16   :  { %371 = vmatpush3.msra.mxu1 %v133_v6  ;;  %378 = vmatpush3.msra.mxu0 %v221_v8  ;;  %v345_v28 = vld [vmem:[%s561_s8] ss:$0 sm:$0xff] }
  0x17   :  { %372 = vmatprep.subr.mxu1 %v445_v0  ;;  %379 = vmatprep.subr.mxu0 %v445_v0 }
  0x18   :  { %373 = vmatpush3.msra.mxu1 %v132_v7  ;;  %380 = vmatpush3.msra.mxu0 %v220_v14 }
  0x19   :  { %381 = vmatprep.subr.mxu0 %v445_v0 }
  0x1a   :  { %382 = vmatpush3.msra.mxu0 %v219_v15 }
  0x1b   :  { %383 = vmatprep.subr.mxu0 %v445_v0 }
  0x1c   :  { %384 = vmatpush3.msra.mxu0 %v218_v16 }
  0xd4   :  { %v127_v10 = vpop.f32.mrf.mxu0 }
  0xd5   :  { %v128_v11 = vadd.f32 %v338_v9, %v127_v10 }
  0xd6   :  { %v365_v12 = vpop.f32.mrf.mxu0 }
  0xd7   :  { %v131_v13 = vmax.f32 %v128_v11, 0.0 }
  0xd9   :  { %375 = vmatmul.mubr.msk.f32.vlgmr.msra.gmra.mxu1 %vm143_vm2, %v131_v13 }
 0x199   :  { %v213_v18 = vpop.f32.mrf.mxu1 }
 0x19a   :  { %v214_v19 = vadd.f32 %v340_v17, %v213_v18 }
 0x19b   :  { %v376_v20 = vpop.f32.mrf.mxu1 }
 0x19c   :  { %v217_v21 = vmax.f32 %v214_v19, 0.0 }
 0x19e   :  { %386 = vmatmul.mubr.msk.f32.vlgmr.msra.gmra.mxu0 %vm143_vm2, %v217_v21 }
 0x25e   :  { %v298_v23 = vpop.f32.mrf.mxu0 }
 0x25f   :  { %v299_v24 = vadd.f32 %v342_v22, %v298_v23 }
 0x260   :  { %v387_v25 = vpop.f32.mrf.mxu0 }
 0x261   :  { %396 = vtanh.f32 %v299_v24 }
 0x26e   :  { %v397_v27 = vpop.eup %396 }
 0x26f   :  { %v310_v29 = vmul.f32 %v397_v27, %v344_v26 }
 0x271   :  { %v318_v30 = vadd.f32 %v345_v28, %v310_v29 }
 0x273   :  { %320 = vst.msk [vmem:[#allocation5] sm:$0xff] %vm319_vm3, %v318_v30 }
 0x274   :  { %325 = vsyncadd [#allocation4], 96  ;;  %s447_s17 = smov [#allocation5]  }
 0x275   :  { %s326_s6 = sshll.u32 %s447_s17, 4  ;;  %s327_s6 = int_to_ptr.vmem [resolvable:$true] %s326_s6 }
 0x276   :  { %s418_s18 = scalar_lea.vmem %s327_s6, 32  ;;  %s422_s1 = scalar_lea.vmem %s327_s6, 128 }
 0x277   :  { %p419_p5 = scmp.ne.s32.totalorder %s327_s6, %s418_s18  ;;  %p423_p6 = scmp.lt.s32.totalorder %s327_s6, %s327_s6 }
 0x278   :  { %p424_p7 = scmp.lt.s32.totalorder %s422_s1, %s418_s18 }
 0x27a   :  { %p425_p8 = por %p424_p7, %p423_p6 }
 0x27c   :  { %p426_p9 = pnand %p425_p8, %p419_p5 }
 0x27e   :  { %429 = shalt.err (!%p426_p9)
}
 0x27f   :  { %s448_s7 = smov 32   ;;  %s449_s19 = smov 2  }
 0x280   :  { %332 = dma.vmem_to_hbm [thread:$0]  %s327_s6, 32, %s562_s9, [#allocation4], %s448_s7, %s448_s7, %s449_s19  }
 0x281   :  { %440 = dma.done.wait [#allocation4], 128  }
 0x282   :  { %441 = vsyncadd [#allocation4], 4294967168 }
 0x283   :  { %336 = vsyncpa [#allocation3], 1 }
 0x284   :  { %337 = vsyncpa [#allocation4], 1 }

</bundles_post_ra>
